<compile_context>
chip_gen: v5e
topology: v5e:2x2
jax: 0.10.0
libtpu: 0.0.40
codegen_flags: <defaults>
</compile_context>

<pallas_src>
import functools
import math

import jax
import jax.numpy as jnp
from jax import lax
from jax.experimental import pallas as pl
from jax.experimental.pallas import tpu as pltpu


def _msa2_kernel(x_ref, y_ref, wq_ref, bq_ref, wkv_ref, bkv_ref, wo_ref, bo_ref,
                 o_ref, *, TB, L, Lp, D, head_dim, Hp, scale):
    f32 = jnp.float32
    Dp = wq_ref.shape[1]

    # Block-diagonal head indicators built from iota + range compares (VPU only).
    r = lax.broadcasted_iota(jnp.int32, (Dp, Hp), 0)    # channel lane
    c = lax.broadcasted_iota(jnp.int32, (Dp, Hp), 1)    # head index
    hmat = ((r >= c * head_dim) & (r < (c + 1) * head_dim) & (r < D)).astype(f32)
    rt = lax.broadcasted_iota(jnp.int32, (Hp, Dp), 0)   # head index
    ct = lax.broadcasted_iota(jnp.int32, (Hp, Dp), 1)   # channel lane
    hmat_t = ((ct >= rt * head_dim) & (ct < (rt + 1) * head_dim) & (ct < D)).astype(f32)

    # Projections.  q path is tiny -> stays f32; K|V is one fused 256-wide bf16 matmul
    # with f32 accumulation (the dominant MXU / DMA work).
    q = jnp.dot(x_ref[...], wq_ref[...], preferred_element_type=f32) + bq_ref[...]      # (TB, Dp)
    kv = jnp.dot(y_ref[...], wkv_ref[...], preferred_element_type=f32) + bkv_ref[...]   # (TB*Lp, 2Dp)
    k = kv[:, :Dp]

    # All-head scores in one matmul against the head indicator.
    qk = (q[:, None, :] * k.reshape(TB, Lp, Dp)).reshape(TB * Lp, Dp)                    # f32
    s3 = (jnp.dot(qk, hmat, preferred_element_type=f32) * scale).reshape(TB, Lp, Hp)

    # Softmax over L with deferred normalization (dropout is identity in eval mode).
    m = jnp.max(s3, axis=1, keepdims=True)                      # (TB, 1, Hp)
    p = jnp.exp(s3 - m)                                         # (TB, Lp, Hp), un-normalized
    if Lp != L:                                                 # zero out padded positions
        l_ids = lax.broadcasted_iota(jnp.int32, (Lp, Hp), 0)
        p = p * (l_ids < L).astype(f32)[None]
    denom = jnp.sum(p, axis=1)                                  # (TB, Hp)

    # Expand un-normalized probabilities onto the Dp lanes, weight V, reduce over L.
    p_exp = jnp.dot(p.reshape(TB * Lp, Hp), hmat_t, preferred_element_type=f32)          # (TB*Lp, Dp)
    v = kv[:, Dp:]                                              # consumed right before the reduction
    att = jnp.sum((p_exp * v).reshape(TB, Lp, Dp), axis=1)                                # (TB, Dp)

    # Single normalization at (TB, Dp) granularity (instead of over the (TB, Lp, Hp) tensor).
    att = att * jnp.dot(pl.reciprocal(denom, approx=True), hmat_t,
                        preferred_element_type=f32)

    # Output projection onto lane-dense (128-multiple) columns.
    o_ref[...] = jnp.dot(att, wo_ref[...], preferred_element_type=f32) + bo_ref[...]


def msa2_forward(x4d, y4d, params, *, nhead, head_dim):
    """x4d: (B, nhid, 1, 1) NCHW; y4d: (B, nhid, L, 1) NCHW. Returns (B, nhid, 1, 1) f32."""
    Wq, bq, Wk, bk, Wv, bv, Wo, bo = params          # 1x1 conv weights stored as (out, in)
    B, nhid = x4d.shape[0], x4d.shape[1]
    L = y4d.shape[2]
    D = nhead * head_dim

    ru = lambda a, m: -(-a // m) * m
    Dp = ru(D, 128)              # head-channel lanes padded to full vregs
    Hp = ru(nhead, 128)          # per-head score lanes
    nhid_p = ru(nhid, 128)       # lane-dense output columns
    Lp = ru(L, 8)                # sublane-aligned sequence length

    # ---- batch tile size: VMEM budget + >= 2 grid steps for the v7x megacore ----------
    bytes_per_row = (2 * 2 * Lp * nhid                 # y tile (bf16, double-buffered)
                     + 2 * 4 * nhid + 2 * 4 * nhid_p   # x / out tiles (f32, double-buffered)
                     + (2 + 6) * Lp * Dp * 4)          # kv + ~6 live f32 (Lp, 128) temporaries
    budget = 12 << 20                                  # headroom inside the 32 MiB scoped VMEM
    tb_cap = max(8, min(256, (budget // bytes_per_row) // 8 * 8))
    if B <= 8:
        TB = ru(B, 8)                                  # one step; too small to split usefully
    else:
        n_steps = max(2, -(-B // tb_cap))              # >= 2 steps so both v7x cores get work
        TB = ru(-(-B // n_steps), 8)
    Bp = ru(B, TB)

    f32, bf16 = jnp.float32, jnp.bfloat16
    pad2 = lambda a, rr, cc: jnp.pad(a, ((0, rr - a.shape[0]), (0, cc - a.shape[1])))

    # ---- operand prep ------------------------------------------------------------------
    x_k = jnp.pad(x4d[:, :, 0, 0].astype(f32), ((0, Bp - B), (0, 0)))                    # (Bp, nhid)
    # TODO(synk): have the producer emit y as (B, L, nhid) bf16 so this fused
    # transpose+cast+pad pass over y disappears entirely.
    y_k = jnp.transpose(y4d[:, :, :, 0], (0, 2, 1)).astype(bf16)                          # (B, L, nhid)
    y_k = jnp.pad(y_k, ((0, Bp - B), (0, Lp - L), (0, 0))).reshape(Bp * Lp, nhid)

    wq_k = pad2(Wq.T.astype(f32), nhid, Dp)                                              # (nhid, Dp)
    wkv_k = jnp.concatenate([pad2(Wk.T, nhid, Dp),
                             pad2(Wv.T, nhid, Dp)], axis=1).astype(bf16)                 # (nhid, 2*Dp)
    bq_k = pad2(bq.reshape(1, D).astype(f32), 1, Dp)
    bkv_k = jnp.concatenate([pad2(bk.reshape(1, D).astype(f32), 1, Dp),
                             pad2(bv.reshape(1, D).astype(f32), 1, Dp)], axis=1)         # (1, 2*Dp)
    wo_k = pad2(Wo.T.astype(f32), Dp, nhid_p)                                            # (Dp, nhid_p)
    bo_k = pad2(bo.reshape(1, nhid).astype(f32), 1, nhid_p)                              # (1, nhid_p)

    full = lambda shape: pl.BlockSpec(shape, lambda b: (0,) * len(shape))
    kern = functools.partial(_msa2_kernel, TB=TB, L=L, Lp=Lp, D=D, head_dim=head_dim,
                             Hp=Hp, scale=1.0 / math.sqrt(head_dim))

    out = pl.pallas_call(
        kern,
        out_shape=jax.ShapeDtypeStruct((Bp, nhid_p), f32),
        grid_spec=pltpu.PrefetchScalarGridSpec(
            num_scalar_prefetch=0,
            grid=(Bp // TB,),
            in_specs=[
                pl.BlockSpec((TB, nhid), lambda b: (b, 0)),          # x tile
                pl.BlockSpec((TB * Lp, nhid), lambda b: (b, 0)),     # y tile (batch*seq rows)
                full((nhid, Dp)), full((1, Dp)),                     # Wq, bq
                full((nhid, 2 * Dp)), full((1, 2 * Dp)),             # Wk|Wv fused, bk|bv
                full((Dp, nhid_p)), full((1, nhid_p)),               # Wo, bo (lane-dense)
            ],
            out_specs=pl.BlockSpec((TB, nhid_p), lambda b: (b, 0)),
        ),
        compiler_params=pltpu.CompilerParams(
            dimension_semantics=("parallel",),
            vmem_limit_bytes=32 * 1024 * 1024,
        ),
    )(x_k, y_k, wq_k, bq_k, wkv_k, bkv_k, wo_k, bo_k)

    return out[:B, :nhid].reshape(B, nhid, 1, 1)


def msa2_reference(x4d, y4d, params, *, nhead, head_dim):
    """Pure-JAX f32 transcription of the PyTorch forward (mask=None, eval mode)."""
    Wq, bq, Wk, bk, Wv, bv, Wo, bo = params
    B, nhid = x4d.shape[0], x4d.shape[1]
    L = y4d.shape[2]
    D = nhead * head_dim
    xq = jnp.einsum('bc,oc->bo', x4d[:, :, 0, 0], Wq) + bq                       # (B, D)
    kk = jnp.einsum('bcl,oc->bol', y4d[:, :, :, 0], Wk) + bk[None, :, None]      # (B, D, L)
    vv = jnp.einsum('bcl,oc->bol', y4d[:, :, :, 0], Wv) + bv[None, :, None]
    q = xq.reshape(B, nhead, 1, head_dim)
    k = kk.reshape(B, nhead, head_dim, L)
    v = jnp.transpose(vv.reshape(B, nhead, head_dim, L), (0, 1, 3, 2))
    pre_a = jnp.matmul(q, k) / math.sqrt(head_dim)
    alphas = jax.nn.softmax(pre_a, axis=3)
    att = jnp.matmul(alphas, v).reshape(B, D)
    out = jnp.einsum('bd,od->bo', att, Wo) + bo
    return out.reshape(B, nhid, 1, 1)


if __name__ == "__main__":
    # Small, module-consistent shapes (module defaults nhead=10, head_dim=10).
    B, nhid, L = 2, 16, 8
    nhead, head_dim = 10, 10
    D = nhead * head_dim

    key = jax.random.PRNGKey(0)
    ks = jax.random.split(key, 10)
    # Deterministic synthetic parameters (1x1 conv weights stored as (out, in)).
    Wq = 0.1 * jax.random.normal(ks[0], (D, nhid), jnp.float32)
    bq = 0.1 * jax.random.normal(ks[1], (D,), jnp.float32)
    Wk = 0.1 * jax.random.normal(ks[2], (D, nhid), jnp.float32)
    bk = 0.1 * jax.random.normal(ks[3], (D,), jnp.float32)
    Wv = 0.1 * jax.random.normal(ks[4], (D, nhid), jnp.float32)
    bv = 0.1 * jax.random.normal(ks[5], (D,), jnp.float32)
    Wo = 0.1 * jax.random.normal(ks[6], (nhid, D), jnp.float32)
    bo = 0.1 * jax.random.normal(ks[7], (nhid,), jnp.float32)
    params = (Wq, bq, Wk, bk, Wv, bv, Wo, bo)

    x = jax.random.normal(ks[8], (B, nhid, 1, 1), jnp.float32)   # NCHW
    y = jax.random.normal(ks[9], (B, nhid, L, 1), jnp.float32)   # NCHW

    out = msa2_forward(x, y, params, nhead=nhead, head_dim=head_dim)
    out = jax.block_until_ready(out)

    ref = msa2_reference(x, y, params, nhead=nhead, head_dim=head_dim)
    assert out.shape == (B, nhid, 1, 1)
    # bf16 K/V-projection operands (f32 accumulation) + approx reciprocal in the softmax
    # denominator => compare against the exact-f32 reference with bf16-level tolerance.
    assert jnp.allclose(out, ref, atol=2e-2, rtol=2e-2), "mismatch vs reference"

    print("KERNEL_OK")
</pallas_src>

<mosaic_0001>
module attributes {stable_mosaic.version = 11 : i64} {
  func.func @_msa2_kernel(%arg0: i32, %arg1: memref<8x16xf32, #tpu.memory_space<vmem>>, %arg2: memref<64x16xbf16, #tpu.memory_space<vmem>>, %arg3: memref<16x128xf32, #tpu.memory_space<vmem>>, %arg4: memref<1x128xf32, #tpu.memory_space<vmem>>, %arg5: memref<16x256xbf16, #tpu.memory_space<vmem>>, %arg6: memref<1x256xf32, #tpu.memory_space<vmem>>, %arg7: memref<128x128xf32, #tpu.memory_space<vmem>>, %arg8: memref<1x128xf32, #tpu.memory_space<vmem>>, %arg9: memref<8x128xf32, #tpu.memory_space<vmem>>) attributes {dimension_semantics = [#tpu.dimension_semantics<parallel>], iteration_bounds = array<i64: 1>, scalar_prefetch = 0 : i64, scratch_operands = 0 : i64, tpu.core_type = #tpu.core_type<tc>, window_params = [{transform_indices = @transform_0, window_bounds = array<i64: 8, 16>}, {transform_indices = @transform_1, window_bounds = array<i64: 64, 16>}, {pipeline_mode = #tpu.pipeline_mode<synchronous>, transform_indices = @transform_2, window_bounds = array<i64: 16, 128>}, {pipeline_mode = #tpu.pipeline_mode<synchronous>, transform_indices = @transform_3, window_bounds = array<i64: 1, 128>}, {pipeline_mode = #tpu.pipeline_mode<synchronous>, transform_indices = @transform_4, window_bounds = array<i64: 16, 256>}, {pipeline_mode = #tpu.pipeline_mode<synchronous>, transform_indices = @transform_5, window_bounds = array<i64: 1, 256>}, {pipeline_mode = #tpu.pipeline_mode<synchronous>, transform_indices = @transform_6, window_bounds = array<i64: 128, 128>}, {pipeline_mode = #tpu.pipeline_mode<synchronous>, transform_indices = @transform_7, window_bounds = array<i64: 1, 128>}, {transform_indices = @transform_8, window_bounds = array<i64: 8, 128>}]} {
    %0 = tpu.iota {dimensions = array<i32: 0>} : vector<128x128xi32>
    %1 = tpu.iota {dimensions = array<i32: 1>} : vector<128x128xi32>
    %c10_i32 = arith.constant 10 : i32
    %2 = vector.broadcast %c10_i32 : i32 to vector<128x128xi32>
    %3 = arith.muli %1, %2 : vector<128x128xi32>
    %4 = arith.cmpi sge, %0, %3 : vector<128x128xi32>
    %c1_i32 = arith.constant 1 : i32
    %5 = vector.broadcast %c1_i32 : i32 to vector<128x128xi32>
    %6 = arith.addi %1, %5 : vector<128x128xi32>
    %c10_i32_0 = arith.constant 10 : i32
    %7 = vector.broadcast %c10_i32_0 : i32 to vector<128x128xi32>
    %8 = arith.muli %6, %7 : vector<128x128xi32>
    %9 = arith.cmpi slt, %0, %8 : vector<128x128xi32>
    %10 = arith.andi %4, %9 : vector<128x128xi1>
    %c100_i32 = arith.constant 100 : i32
    %11 = vector.broadcast %c100_i32 : i32 to vector<128x128xi32>
    %12 = arith.cmpi slt, %0, %11 : vector<128x128xi32>
    %13 = arith.andi %10, %12 : vector<128x128xi1>
    %14 = arith.extui %13 : vector<128x128xi1> to vector<128x128xi32>
    %15 = arith.sitofp %14 : vector<128x128xi32> to vector<128x128xf32>
    %16 = tpu.iota {dimensions = array<i32: 0>} : vector<128x128xi32>
    %17 = tpu.iota {dimensions = array<i32: 1>} : vector<128x128xi32>
    %c10_i32_1 = arith.constant 10 : i32
    %18 = vector.broadcast %c10_i32_1 : i32 to vector<128x128xi32>
    %19 = arith.muli %16, %18 : vector<128x128xi32>
    %20 = arith.cmpi sge, %17, %19 : vector<128x128xi32>
    %c1_i32_2 = arith.constant 1 : i32
    %21 = vector.broadcast %c1_i32_2 : i32 to vector<128x128xi32>
    %22 = arith.addi %16, %21 : vector<128x128xi32>
    %c10_i32_3 = arith.constant 10 : i32
    %23 = vector.broadcast %c10_i32_3 : i32 to vector<128x128xi32>
    %24 = arith.muli %22, %23 : vector<128x128xi32>
    %25 = arith.cmpi slt, %17, %24 : vector<128x128xi32>
    %26 = arith.andi %20, %25 : vector<128x128xi1>
    %c100_i32_4 = arith.constant 100 : i32
    %27 = vector.broadcast %c100_i32_4 : i32 to vector<128x128xi32>
    %28 = arith.cmpi slt, %17, %27 : vector<128x128xi32>
    %29 = arith.andi %26, %28 : vector<128x128xi1>
    %30 = arith.extui %29 : vector<128x128xi1> to vector<128x128xi32>
    %31 = arith.sitofp %30 : vector<128x128xi32> to vector<128x128xf32>
    %c0 = arith.constant 0 : index
    %c0_5 = arith.constant 0 : index
    %32 = vector.load %arg1[%c0, %c0_5] : memref<8x16xf32, #tpu.memory_space<vmem>>, vector<8x16xf32>
    %c0_6 = arith.constant 0 : index
    %c0_7 = arith.constant 0 : index
    %33 = vector.load %arg3[%c0_6, %c0_7] : memref<16x128xf32, #tpu.memory_space<vmem>>, vector<16x128xf32>
    %cst = arith.constant dense<0.000000e+00> : vector<8x128xf32>
    %34 = tpu.matmul %32, %33, %cst {dimension_numbers = #tpu.dot_dimension_numbers<[1], [0], [0], [1], [0, 0, 1, 1], [], []>} : vector<8x16xf32>, vector<16x128xf32>, vector<8x128xf32> -> vector<8x128xf32>
    %c0_8 = arith.constant 0 : index
    %c0_9 = arith.constant 0 : index
    %35 = vector.load %arg4[%c0_8, %c0_9] : memref<1x128xf32, #tpu.memory_space<vmem>>, vector<1x128xf32>
    %36 = vector.broadcast %35 : vector<1x128xf32> to vector<8x128xf32>
    %37 = arith.addf %34, %36 : vector<8x128xf32>
    %c0_10 = arith.constant 0 : index
    %c0_11 = arith.constant 0 : index
    %38 = vector.load %arg2[%c0_10, %c0_11] : memref<64x16xbf16, #tpu.memory_space<vmem>>, vector<64x16xbf16>
    %c0_12 = arith.constant 0 : index
    %c0_13 = arith.constant 0 : index
    %39 = vector.load %arg5[%c0_12, %c0_13] : memref<16x256xbf16, #tpu.memory_space<vmem>>, vector<16x256xbf16>
    %cst_14 = arith.constant dense<0.000000e+00> : vector<64x256xf32>
    %40 = tpu.matmul %38, %39, %cst_14 {dimension_numbers = #tpu.dot_dimension_numbers<[1], [0], [0], [1], [0, 0, 1, 1], [], []>} : vector<64x16xbf16>, vector<16x256xbf16>, vector<64x256xf32> -> vector<64x256xf32>
    %c0_15 = arith.constant 0 : index
    %c0_16 = arith.constant 0 : index
    %41 = vector.load %arg6[%c0_15, %c0_16] : memref<1x256xf32, #tpu.memory_space<vmem>>, vector<1x256xf32>
    %42 = vector.broadcast %41 : vector<1x256xf32> to vector<64x256xf32>
    %43 = arith.addf %40, %42 : vector<64x256xf32>
    %44 = vector.extract_strided_slice %43 {offsets = [0, 0], sizes = [64, 128], strides = [1, 1]} : vector<64x256xf32> to vector<64x128xf32>
    %45 = vector.shape_cast %37 : vector<8x128xf32> to vector<8x1x128xf32>
    %46 = vector.shape_cast %44 : vector<64x128xf32> to vector<8x8x128xf32>
    %47 = vector.broadcast %45 : vector<8x1x128xf32> to vector<8x8x128xf32>
    %48 = arith.mulf %47, %46 : vector<8x8x128xf32>
    %49 = vector.shape_cast %48 : vector<8x8x128xf32> to vector<64x128xf32>
    %cst_17 = arith.constant dense<0.000000e+00> : vector<64x128xf32>
    %50 = tpu.matmul %49, %15, %cst_17 {dimension_numbers = #tpu.dot_dimension_numbers<[1], [0], [0], [1], [0, 0, 1, 1], [], []>} : vector<64x128xf32>, vector<128x128xf32>, vector<64x128xf32> -> vector<64x128xf32>
    %cst_18 = arith.constant 0.316227764 : f32
    %51 = vector.broadcast %cst_18 : f32 to vector<64x128xf32>
    %52 = arith.mulf %50, %51 : vector<64x128xf32>
    %53 = vector.shape_cast %52 : vector<64x128xf32> to vector<8x8x128xf32>
    %cst_19 = arith.constant dense<0xFF800000> : vector<8x128xf32>
    %54 = vector.multi_reduction <maximumf>, %53, %cst_19 [1] : vector<8x8x128xf32> to vector<8x128xf32>
    %55 = vector.shape_cast %54 : vector<8x128xf32> to vector<8x1x128xf32>
    %56 = vector.broadcast %55 : vector<8x1x128xf32> to vector<8x8x128xf32>
    %57 = arith.subf %53, %56 : vector<8x8x128xf32>
    %58 = math.exp %57 : vector<8x8x128xf32>
    %cst_20 = arith.constant dense<0.000000e+00> : vector<8x128xf32>
    %59 = vector.multi_reduction <add>, %58, %cst_20 [1] : vector<8x8x128xf32> to vector<8x128xf32>
    %60 = vector.shape_cast %58 : vector<8x8x128xf32> to vector<64x128xf32>
    %cst_21 = arith.constant dense<0.000000e+00> : vector<64x128xf32>
    %61 = tpu.matmul %60, %31, %cst_21 {dimension_numbers = #tpu.dot_dimension_numbers<[1], [0], [0], [1], [0, 0, 1, 1], [], []>} : vector<64x128xf32>, vector<128x128xf32>, vector<64x128xf32> -> vector<64x128xf32>
    %62 = vector.extract_strided_slice %43 {offsets = [0, 128], sizes = [64, 128], strides = [1, 1]} : vector<64x256xf32> to vector<64x128xf32>
    %63 = arith.mulf %61, %62 : vector<64x128xf32>
    %64 = vector.shape_cast %63 : vector<64x128xf32> to vector<8x8x128xf32>
    %cst_22 = arith.constant dense<0.000000e+00> : vector<8x128xf32>
    %65 = vector.multi_reduction <add>, %64, %cst_22 [1] : vector<8x8x128xf32> to vector<8x128xf32>
    %66 = tpu.reciprocal %59 {approx = true} : vector<8x128xf32> -> vector<8x128xf32>
    %cst_23 = arith.constant dense<0.000000e+00> : vector<8x128xf32>
    %67 = tpu.matmul %66, %31, %cst_23 {dimension_numbers = #tpu.dot_dimension_numbers<[1], [0], [0], [1], [0, 0, 1, 1], [], []>} : vector<8x128xf32>, vector<128x128xf32>, vector<8x128xf32> -> vector<8x128xf32>
    %68 = arith.mulf %65, %67 : vector<8x128xf32>
    %c0_24 = arith.constant 0 : index
    %c0_25 = arith.constant 0 : index
    %69 = vector.load %arg7[%c0_24, %c0_25] : memref<128x128xf32, #tpu.memory_space<vmem>>, vector<128x128xf32>
    %cst_26 = arith.constant dense<0.000000e+00> : vector<8x128xf32>
    %70 = tpu.matmul %68, %69, %cst_26 {dimension_numbers = #tpu.dot_dimension_numbers<[1], [0], [0], [1], [0, 0, 1, 1], [], []>} : vector<8x128xf32>, vector<128x128xf32>, vector<8x128xf32> -> vector<8x128xf32>
    %c0_27 = arith.constant 0 : index
    %c0_28 = arith.constant 0 : index
    %71 = vector.load %arg8[%c0_27, %c0_28] : memref<1x128xf32, #tpu.memory_space<vmem>>, vector<1x128xf32>
    %72 = vector.broadcast %71 : vector<1x128xf32> to vector<8x128xf32>
    %73 = arith.addf %70, %72 : vector<8x128xf32>
    %c0_29 = arith.constant 0 : index
    %c0_30 = arith.constant 0 : index
    %74 = vector.load %arg9[%c0_29, %c0_30] : memref<8x128xf32, #tpu.memory_space<vmem>>, vector<8x128xf32>
    tpu.vector_store %arg9[%c0_29, %c0_30], %73 {strides = array<i32>} : memref<8x128xf32, #tpu.memory_space<vmem>>, vector<8x128xf32>,
    return
  }
  func.func @transform_0(%arg0: i32) -> (i32, i32) {
    %c0_i32 = arith.constant 0 : i32
    %c0_i32_0 = arith.constant 0 : i32
    return %arg0, %c0_i32 : i32, i32
  }
  func.func @transform_1(%arg0: i32) -> (i32, i32) {
    %c0_i32 = arith.constant 0 : i32
    %c0_i32_0 = arith.constant 0 : i32
    return %arg0, %c0_i32 : i32, i32
  }
  func.func @transform_2(%arg0: i32) -> (i32, i32) {
    %c0_i32 = arith.constant 0 : i32
    %c0_i32_0 = arith.constant 0 : i32
    %c0_i32_1 = arith.constant 0 : i32
    return %c0_i32, %c0_i32_0 : i32, i32
  }
  func.func @transform_3(%arg0: i32) -> (i32, i32) {
    %c0_i32 = arith.constant 0 : i32
    %c0_i32_0 = arith.constant 0 : i32
    %c0_i32_1 = arith.constant 0 : i32
    return %c0_i32, %c0_i32_0 : i32, i32
  }
  func.func @transform_4(%arg0: i32) -> (i32, i32) {
    %c0_i32 = arith.constant 0 : i32
    %c0_i32_0 = arith.constant 0 : i32
    %c0_i32_1 = arith.constant 0 : i32
    return %c0_i32, %c0_i32_0 : i32, i32
  }
  func.func @transform_5(%arg0: i32) -> (i32, i32) {
    %c0_i32 = arith.constant 0 : i32
    %c0_i32_0 = arith.constant 0 : i32
    %c0_i32_1 = arith.constant 0 : i32
    return %c0_i32, %c0_i32_0 : i32, i32
  }
  func.func @transform_6(%arg0: i32) -> (i32, i32) {
    %c0_i32 = arith.constant 0 : i32
    %c0_i32_0 = arith.constant 0 : i32
    %c0_i32_1 = arith.constant 0 : i32
    return %c0_i32, %c0_i32_0 : i32, i32
  }
  func.func @transform_7(%arg0: i32) -> (i32, i32) {
    %c0_i32 = arith.constant 0 : i32
    %c0_i32_0 = arith.constant 0 : i32
    %c0_i32_1 = arith.constant 0 : i32
    return %c0_i32, %c0_i32_0 : i32, i32
  }
  func.func @transform_8(%arg0: i32) -> (i32, i32) {
    %c0_i32 = arith.constant 0 : i32
    %c0_i32_0 = arith.constant 0 : i32
    return %arg0, %c0_i32 : i32, i32
  }
}

</mosaic_0001>

<bundles_post_ra>
// kernel: tpu_custom_call.1
= control target key start
LH: loop header
LB: loop body
LE: loop exit
PB: predicated region body
PF: predicated region fallthrough
CT: control target
= control target key end

     0   :  { %13 = vsyncpa [#allocation3], 0  ;;  %s1626_s0 = inlined_call_operand.vmem [shape: f32[8,16], index: 0, kind: input, shape index: {}]   ;;  %s1627_s1 = inlined_call_operand.vmem [shape: bf16[64,16], index: 1, kind: input, shape index: {}]   ;;  %s1628_s2 = inlined_call_operand.vmem [shape: f32[16,128], index: 2, kind: input, shape index: {}]   ;;  %s1629_s3 = inlined_call_operand.hbm [shape: f32[1,128], index: 3, kind: input, shape index: {}]   ;;  %s1630_s4 = inlined_call_operand.vmem [shape: bf16[16,256], index: 4, kind: input, shape index: {}]   ;;  %s1631_s5 = inlined_call_operand.vmem [shape: f32[1,256], index: 5, kind: input, shape index: {}]   ;;  %s1632_s6 = inlined_call_operand.hbm [shape: f32[128,128], index: 6, kind: input, shape index: {}]   ;;  %s1633_s7 = inlined_call_operand.vmem [shape: f32[1,128], index: 7, kind: input, shape index: {}]   ;;  %s1634_s8 = inlined_call_operand.hbm [shape: f32[8,128], index: 8, kind: output, shape index: {}]  }
   0x1   :  { %14 = vsyncpa [#allocation6], 0 }
   0x2   :  { %15 = vsyncpa [#allocation4], 0  ;;  %s27_s29 = sshll.u32 %s1629_s3, 4  ;;  %s1173_s30 = smov [#allocation2]   ;;  %s28_s29 = int_to_ptr.hbm [resolvable:$true] %s27_s29 }
   0x3   :  { %s29_s9 = sshll.u32 %s1173_s30, 4  ;;  %s41_s12 = sshll.u32 %s1632_s6, 4  ;;  %s30_s9 = int_to_ptr.vmem [resolvable:$true] %s29_s9  ;;  %s42_s12 = int_to_ptr.hbm [resolvable:$true] %s41_s12 }
   0x4   :  { %32 = dma.hbm_to_vmem [thread:$0]  %s28_s29, 16, %s30_s9, [#allocation3]  }
   0x5   :  { %s1174_s13 = smov [#allocation5]   ;;  %s1175_s15 = smov 128  }
   0x6   :  { %s43_s14 = sshll.u32 %s1174_s13, 4  ;;  %s1176_s16 = smov 8   ;;  %s44_s14 = int_to_ptr.vmem [resolvable:$true] %s43_s14 }
   0x7   :  { %49 = dma.hbm_to_vmem [thread:$0]  %s42_s12, 2048, %s44_s14, [#allocation6], %s1175_s15, %s1175_s15, %s1176_s16  }
   0x8   :  { %1167 = dma.done.wait [#allocation3], 16  }
   0x9   :  { %1168 = vsyncadd [#allocation3], 4294967280 }
   0xa   :  { %1169 = dma.done.wait [#allocation6], 2048  }
   0xb   :  { %1170 = vsyncadd [#allocation6], 4294965248  ;;  %v342_v0 = vld [vmem:[%s1628_s2 + $0x8] sm:$0xff]  ;;  %v341_v1 = vld [vmem:[%s1628_s2] sm:$0xff]  ;;  %vm347_vm0 = vcmask 130048   ;;  %v61_v8 = vlaneseq  ;;  %v1177_v19 = vmov 1.0  }
   0xc   :  { %365 = vmatpush.msra.mxu1 %v342_v0  ;;  %v340_v2 = vld [vmem:[%s1626_s0] sm:$0xff]  ;;  %v1054_v4 = vld [vmem:[%s1630_s4 + $0x4] sm:$0xf0]  ;;  %v1309_v21 = vld [vmem:[%s1627_s1 + $0x10] sm:$0xff]  ;;  %s1178_s14 = smov [#allocation7]   ;;  %s931_s17 = sshll.u32 %s1634_s8, 4  ;;  %s932_s17 = int_to_ptr.hbm [resolvable:$true] %s931_s17 }
   0xd   :  { %v990_v3 = vld [vmem:[%s1630_s4] sm:$0xf]  ;;  %v1256_v7 = vld [vmem:[%s1627_s1 + $0x8] sm:$0xff]  ;;  %v1260_v9 = vshrl.u32 %v61_v8, 7  ;;  %v1262_v10 = vand.u32 127, %v61_v8  ;;  %v1329_v22 = vld [vmem:[%s1627_s1 + $0x18] sm:$0xff] }
   0xe   :  { %v991_v5 = vor.u32 %v1054_v4, %v990_v3  ;;  %366 = vmatpush.msra.mxu1 %v341_v1  ;;  %v1249_v6 = vld [vmem:[%s1627_s1] sm:$0xff]  ;;  %s929_s15 = sshll.u32 %s1178_s14, 4  ;;  %s930_s15 = int_to_ptr.vmem [resolvable:$true] %s929_s15 }
   0xf   :  { %971 = vmatmul.msk.f32.vlgmr.msra.gmra.mxu1 %vm347_vm0, %v340_v2  ;;  %v1265_v11 = vadd.s32 96, %v1260_v9  ;;  %v1268_v12 = vmul.u32 10, %v1262_v10  ;;  %v97_v13 = vadd.s32 1, %v1262_v10  ;;  %v1272_v14 = vadd.s32 88, %v1260_v9  ;;  %v1061_v30 = vld [vmem:[#allocation2] ss:$0 sm:$0xff] }
  0x10   :  { %436 = vmatpush.bf16.msrb.mxu1 %v991_v5  ;;  %v1275_v15 = vadd.s32 80, %v1260_v9  ;;  %v1283_v17 = vadd.s32 72, %v1260_v9  ;;  %v1296_v18 = vadd.s32 64, %v1260_v9  ;;  %v1304_v20 = vadd.s32 56, %v1260_v9  ;;  %v1389_v31 = vld [vmem:[%s1631_s5] sm:$0x3] }
  0x11   :  { %vm93_vm1 = vcmp.ge.s32.totalorder %v1265_v11, %v1268_v12  ;;  %v1279_v16 = vmul.u32 10, %v97_v13  ;;  %vm143_vm2 = vcmp.lt.s32.totalorder %v1265_v11, 100  ;;  %vm92_vm4 = vcmp.ge.s32.totalorder %v1272_v14, %v1268_v12 }
  0x12   :  { %vm91_vm7 = vcmp.ge.s32.totalorder %v1275_v15, %v1268_v12  ;;  %vm90_vm11 = vcmp.ge.s32.totalorder %v1283_v17, %v1268_v12  ;;  %vm89_vm14 = vcmp.ge.s32.totalorder %v1296_v18, %v1268_v12  ;;  %v1334_v23 = vadd.s32 48, %v1260_v9 }
  0x13   :  { %vm111_vm3 = vcmp.lt.s32.totalorder %v1265_v11, %v1279_v16  ;;  %vm110_vm5 = vcmp.lt.s32.totalorder %v1272_v14, %v1279_v16  ;;  %vm109_vm8 = vcmp.lt.s32.totalorder %v1275_v15, %v1279_v16  ;;  %vm108_vm12 = vcmp.lt.s32.totalorder %v1283_v17, %v1279_v16 }
  0x14   :  { %vm127_vm6 = vmand %vm93_vm1, %vm111_vm3  ;;  %vm107_vm15 = vcmp.lt.s32.totalorder %v1296_v18, %v1279_v16  ;;  %vm106_vm3 = vcmp.lt.s32.totalorder %v1304_v20, %v1279_v16  ;;  %v1341_v24 = vadd.s32 40, %v1260_v9  ;;  %v1349_v25 = vadd.s32 32, %v1260_v9 }
  0x15   :  { %vm159_vm9 = vmand %vm127_vm6, %vm143_vm2  ;;  %vm88_vm2 = vcmp.ge.s32.totalorder %v1304_v20, %v1268_v12  ;;  %vm87_vm6 = vcmp.ge.s32.totalorder %v1334_v23, %v1268_v12  ;;  %v1352_v26 = vadd.s32 24, %v1260_v9  ;;  %v1365_v27 = vadd.s32 16, %v1260_v9 }
  0x16   :  { %1004 = vmatpush.msk.msra.mxu3 %vm159_vm9, %v1177_v19  ;;  %vm126_vm10 = vmand %vm92_vm4, %vm110_vm5  ;;  %vm86_vm9 = vcmp.ge.s32.totalorder %v1341_v24, %v1268_v12  ;;  %v1373_v28 = vadd.s32 8, %v1260_v9  ;;  %v1394_v33 = vperm.slane %v1389_v31, 0  ;;  %v77_v54 = vadd.s32 120, %v1260_v9 }
  0x17   :  { %996 = vmatmul.msk.bf16.vlgmr.msrb.gmra.mxu1 %vm347_vm0, %v1249_v6  ;;  %vm125_vm13 = vmand %vm91_vm7, %vm109_vm8  ;;  %vm105_vm7 = vcmp.lt.s32.totalorder %v1334_v23, %v1279_v16  ;;  %v76_v55 = vadd.s32 112, %v1260_v9  ;;  %v75_v56 = vadd.s32 104, %v1260_v9 }
  0x18   :  { %1005 = vmatpush.msk.msra.mxu3 %vm126_vm10, %v1177_v19  ;;  %vm124_vm1 = vmand %vm90_vm11, %vm108_vm12  ;;  %vm104_vm10 = vcmp.lt.s32.totalorder %v1341_v24, %v1279_v16  ;;  %vm85_vm12 = vcmp.ge.s32.totalorder %v1349_v25, %v1268_v12  ;;  %v210_v57 = vmul.u32 10, %v77_v54  ;;  %v242_v58 = vadd.s32 1, %v77_v54 }
  0x19   :  { %vm123_vm4 = vmand %vm89_vm14, %vm107_vm15  ;;  %vm84_vm15 = vcmp.ge.s32.totalorder %v1352_v26, %v1268_v12  ;;  %v209_v59 = vmul.u32 10, %v76_v55  ;;  %v241_v60 = vadd.s32 1, %v76_v55  ;;  %v240_v63 = vadd.s32 1, %v75_v56 }
  0x1a   :  { %1006 = vmatpush.msk.msra.mxu3 %vm125_vm13, %v1177_v19  ;;  %vm122_vm5 = vmand %vm88_vm2, %vm106_vm3  ;;  %vm103_vm13 = vcmp.lt.s32.totalorder %v1349_v25, %v1279_v16  ;;  %vm83_vm3 = vcmp.ge.s32.totalorder %v1365_v27, %v1268_v12  ;;  %v258_v1 = vmul.u32 10, %v242_v58  ;;  %v208_v2 = vmul.u32 10, %v75_v56 }
  0x1b   :  { %vm121_vm8 = vmand %vm87_vm6, %vm105_vm7  ;;  %vm82_vm6 = vcmp.ge.s32.totalorder %v1373_v28, %v1268_v12  ;;  %vm100_vm7 = vcmp.lt.s32.totalorder %v1373_v28, %v1279_v16  ;;  %v257_v3 = vmul.u32 10, %v241_v60  ;;  %v256_v4 = vmul.u32 10, %v240_v63  ;;  %v1053_v63 = vld [vmem:[%s1630_s4 + $0x4] sm:$0xf] }
  0x1c   :  { %1007 = vmatpush.msk.msra.mxu3 %vm124_vm1, %v1177_v19  ;;  %vm120_vm11 = vmand %vm86_vm9, %vm104_vm10  ;;  %vm102_vm1 = vcmp.lt.s32.totalorder %v1352_v26, %v1279_v16  ;;  %vm81_vm9 = vcmp.ge.s32.totalorder %v1260_v9, %v1268_v12  ;;  %vm99_vm10 = vcmp.lt.s32.totalorder %v1260_v9, %v1279_v16  ;;  %v202_v54 = vmul.u32 10, %v1304_v20 }
  0x1d   :  { %vm119_vm14 = vmand %vm85_vm12, %vm103_vm13  ;;  %vm226_vm12 = vcmp.ge.s32.totalorder %v1262_v10, %v210_v57  ;;  %vm291_vm13 = vcmp.lt.s32.totalorder %v1262_v10, 100  ;;  %v232_v58 = vadd.s32 1, %v1341_v24  ;;  %v200_v60 = vmul.u32 10, %v1341_v24  ;;  %v992_v24 = vld [vmem:[%s1630_s4 + $0x8] sm:$0xf0] }
  0x1e   :  { %1008 = vmatpush.msk.msra.mxu3 %vm123_vm4, %v1177_v19  ;;  %vm118_vm2 = vmand %vm84_vm15, %vm102_vm1  ;;  %vm101_vm4 = vcmp.lt.s32.totalorder %v1365_v27, %v1279_v16  ;;  %vm225_vm15 = vcmp.ge.s32.totalorder %v1262_v10, %v209_v59 }
  0x20   :  { %1009 = vmatpush.msk.msra.mxu3 %vm122_vm5, %v1177_v19  ;;  %vm117_vm5 = vmand %vm83_vm3, %vm101_vm4  ;;  %vm224_vm4 = vcmp.ge.s32.totalorder %v1262_v10, %v208_v2  ;;  %v199_v2 = vmul.u32 10, %v1349_v25 }
  0x22   :  { %1010 = vmatpush.msk.msra.mxu3 %vm121_vm8, %v1177_v19  ;;  %vm116_vm8 = vmand %vm82_vm6, %vm100_vm7 }
  0x24   :  { %1011 = vmatpush.msk.msra.mxu3 %vm120_vm11, %v1177_v19  ;;  %vm115_vm11 = vmand %vm81_vm9, %vm99_vm10 }
  0x26   :  { %1012 = vmatpush.msk.msra.mxu3 %vm119_vm14, %v1177_v19  ;;  %vm274_vm14 = vcmp.lt.s32.totalorder %v1262_v10, %v258_v1 }
  0x27   :  { %997 = vmatmul.msk.bf16.gmra.mxu1 %vm347_vm0, %v1256_v7  ;;  %vm290_vm1 = vmand %vm226_vm12, %vm274_vm14 }
  0x28   :  { %1013 = vmatpush.msk.msra.mxu3 %vm118_vm2, %v1177_v19  ;;  %vm273_vm2 = vcmp.lt.s32.totalorder %v1262_v10, %v257_v3  ;;  %vm307_vm3 = vmand %vm290_vm1, %vm291_vm13  ;;  %v230_v3 = vadd.s32 1, %v1352_v26 }
  0x29   :  { %1017 = vmatpush.msk.msra.mxu0 %vm307_vm3, %v1177_v19  ;;  %vm289_vm6 = vmand %vm225_vm15, %vm273_vm2  ;;  %1033 = vmatpush.msk.msra.mxu1 %vm307_vm3, %v1177_v19 }
  0x2a   :  { %1014 = vmatpush.msk.msra.mxu3 %vm117_vm5, %v1177_v19  ;;  %vm272_vm5 = vcmp.lt.s32.totalorder %v1262_v10, %v256_v4  ;;  %vm306_vm7 = vmand %vm289_vm6, %vm291_vm13  ;;  %v995_v4 = vor.u32 %v1053_v63, %v992_v24 }
  0x2b   :  { %1018 = vmatpush.msk.msra.mxu0 %vm306_vm7, %v1177_v19  ;;  %1034 = vmatpush.msk.msra.mxu1 %vm306_vm7, %v1177_v19 }
  0x2c   :  { %1015 = vmatpush.msk.msra.mxu3 %vm116_vm8, %v1177_v19  ;;  %vm288_vm8 = vmand %vm224_vm4, %vm272_vm5  ;;  %465 = vmatpush.bf16.msra.mxu2 %v995_v4 }
  0x2d   :  { %vm305_vm9 = vmand %vm288_vm8, %vm291_vm13 }
  0x2e   :  { %1016 = vmatpush.msk.msra.mxu3 %vm115_vm11, %v1177_v19  ;;  %1019 = vmatpush.msk.msra.mxu0 %vm305_vm9, %v1177_v19 }
  0x2f   :  { %1035 = vmatpush.msk.msra.mxu1 %vm305_vm9, %v1177_v19  ;;  %1000 = vmatmul.msk.bf16.vlgmr.msra.gmra.mxu2 %vm347_vm0, %v1249_v6  ;;  %v195_v6 = vmul.u32 10, %v1260_v9 }
  0x37   :  { %998 = vmatmul.msk.bf16.gmra.mxu1 %vm347_vm0, %v1309_v21 }
  0x3f   :  { %1001 = vmatmul.msk.bf16.gmra.mxu2 %vm347_vm0, %v1256_v7 }
  0x47   :  { %999 = vmatmul.msk.bf16.gmra.mxu1 %vm347_vm0, %v1329_v22 }
  0x4f   :  { %1002 = vmatmul.msk.bf16.gmra.mxu2 %vm347_vm0, %v1309_v21 }
  0x5f   :  { %1003 = vmatmul.msk.bf16.gmra.mxu2 %vm347_vm0, %v1329_v22  ;;  %vm801_vm0 = vcmask 1041409  }
  0x8c   :  { %v368_v29 = vpop.f32.mrf.mxu1 }
  0x8d   :  { %v1391_v32 = vadd.f32 %v1061_v30, %v368_v29 }
  0x8f   :  { %v495_v36 = vperm.slane %v1391_v32, 0  ;;  %v488_v38 = vrot.slane %v1391_v32, 1  ;;  %v489_v43 = vrot.slane %v1391_v32, 2  ;;  %v490_v48 = vrot.slane %v1391_v32, 3 }
  0x90   :  { %v491_v53 = vrot.slane %v1391_v32, 4  ;;  %v492_v8 = vrot.slane %v1391_v32, 5  ;;  %v493_v30 = vrot.slane %v1391_v32, 6 }
  0x91   :  { %v496_v41 = vperm.slane %v488_v38, 0  ;;  %v497_v46 = vperm.slane %v489_v43, 0  ;;  %v498_v51 = vperm.slane %v490_v48, 0  ;;  %v494_v38 = vrot.slane %v1391_v32, 7 }
  0x92   :  { %v499_v62 = vperm.slane %v491_v53, 0  ;;  %v500_v16 = vperm.slane %v492_v8, 0  ;;  %v239_v43 = vadd.s32 1, %v1265_v11  ;;  %v236_v48 = vadd.s32 1, %v1283_v17 }
  0x94   :  { %v438_v34 = vpop.f32.mrf.mxu1 }
  0x95   :  { %v439_v35 = vadd.f32 %v438_v34, %v1394_v33 }
  0x97   :  { %v511_v37 = vmul.f32 %v495_v36, %v439_v35  ;;  %v501_v36 = vperm.slane %v493_v30, 0  ;;  %v228_v30 = vadd.s32 1, %v1373_v28 }
  0x99   :  { %535 = vmatmul.f32.vlgmr.msra.gmra.mxu3 %v511_v37 }
  0x9c   :  { %v440_v39 = vpop.f32.mrf.mxu1 }
  0x9d   :  { %v441_v40 = vadd.f32 %v440_v39, %v1394_v33 }
  0x9f   :  { %v512_v42 = vmul.f32 %v496_v41, %v441_v40  ;;  %v502_v41 = vperm.slane %v494_v38, 0 }
  0xa1   :  { %538 = vmatmul.f32.gmra.mxu3 %v512_v42 }
  0xa4   :  { %v443_v44 = vpop.f32.mrf.mxu1 }
  0xa5   :  { %v444_v45 = vadd.f32 %v443_v44, %v1394_v33  ;;  %v207_v44 = vmul.u32 10, %v1265_v11  ;;  %v205_v11 = vmul.u32 10, %v1275_v15 }
  0xa7   :  { %v513_v47 = vmul.f32 %v497_v46, %v444_v45  ;;  %v255_v45 = vmul.u32 10, %v239_v43  ;;  %v238_v46 = vadd.s32 1, %v1272_v14  ;;  %vm223_vm10 = vcmp.ge.s32.totalorder %v1262_v10, %v207_v44 }
  0xa8   :  { %vm221_vm4 = vcmp.ge.s32.totalorder %v1262_v10, %v205_v11 }
  0xa9   :  { %541 = vmatmul.f32.gmra.mxu3 %v513_v47  ;;  %vm271_vm11 = vcmp.lt.s32.totalorder %v1262_v10, %v255_v45  ;;  %v206_v47 = vmul.u32 10, %v1272_v14  ;;  %v254_v32 = vmul.u32 10, %v238_v46  ;;  %v204_v14 = vmul.u32 10, %v1283_v17 }
  0xaa   :  { %vm287_vm12 = vmand %vm223_vm10, %vm271_vm11  ;;  %v234_v17 = vadd.s32 1, %v1304_v20  ;;  %v201_v20 = vmul.u32 10, %v1334_v23 }
  0xab   :  { %vm304_vm14 = vmand %vm287_vm12, %vm291_vm13  ;;  %vm222_vm15 = vcmp.ge.s32.totalorder %v1262_v10, %v206_v47  ;;  %vm270_vm1 = vcmp.lt.s32.totalorder %v1262_v10, %v254_v32  ;;  %vm220_vm7 = vcmp.ge.s32.totalorder %v1262_v10, %v204_v14 }
  0xac   :  { %v445_v49 = vpop.f32.mrf.mxu1  ;;  %1020 = vmatpush.msk.msra.mxu0 %vm304_vm14, %v1177_v19  ;;  %vm286_vm2 = vmand %vm222_vm15, %vm270_vm1  ;;  %1036 = vmatpush.msk.msra.mxu1 %vm304_vm14, %v1177_v19  ;;  %v250_v55 = vmul.u32 10, %v234_v17  ;;  %vm1479_vm1 = vcmp.ge.s32.totalorder %v1262_v10, %v202_v54 }
  0xad   :  { %v446_v50 = vadd.f32 %v445_v49, %v1394_v33  ;;  %vm303_vm3 = vmand %vm286_vm2, %vm291_vm13 }
  0xae   :  { %1021 = vmatpush.msk.msra.mxu0 %vm303_vm3, %v1177_v19  ;;  %1037 = vmatpush.msk.msra.mxu1 %vm303_vm3, %v1177_v19  ;;  %vm266_vm3 = vcmp.lt.s32.totalorder %v1262_v10, %v250_v55 }
  0xaf   :  { %v514_v52 = vmul.f32 %v498_v51, %v446_v50  ;;  %v252_v50 = vmul.u32 10, %v236_v48  ;;  %v235_v51 = vadd.s32 1, %v1296_v18 }
  0xb1   :  { %544 = vmatmul.f32.gmra.mxu3 %v514_v52  ;;  %vm268_vm8 = vcmp.lt.s32.totalorder %v1262_v10, %v252_v50  ;;  %v251_v52 = vmul.u32 10, %v235_v51 }
  0xb2   :  { %vm284_vm10 = vmand %vm220_vm7, %vm268_vm8 }
  0xb3   :  { %vm267_vm12 = vcmp.lt.s32.totalorder %v1262_v10, %v251_v52  ;;  %vm301_vm14 = vmand %vm284_vm10, %vm291_vm13 }
  0xb4   :  { %v448_v61 = vpop.f32.mrf.mxu1 }
  0xb5   :  { %v449_v0 = vadd.f32 %v448_v61, %v1394_v33  ;;  %v248_v61 = vmul.u32 10, %v232_v58 }
  0xb7   :  { %v515_v5 = vmul.f32 %v499_v62, %v449_v0  ;;  %v231_v62 = vadd.s32 1, %v1349_v25  ;;  %vm1524_vm10 = vcmp.lt.s32.totalorder %v1262_v10, %v248_v61  ;;  %v198_v25 = vmul.u32 10, %v1352_v26 }
  0xb8   :  { %v197_v26 = vmul.u32 10, %v1365_v27 }
  0xb9   :  { %547 = vmatmul.f32.gmra.mxu3 %v515_v5  ;;  %v247_v5 = vmul.u32 10, %v231_v62 }
  0xbc   :  { %v450_v12 = vpop.f32.mrf.mxu1 }
  0xbd   :  { %v451_v13 = vadd.f32 %v450_v12, %v1394_v33  ;;  %v246_v12 = vmul.u32 10, %v230_v3 }
  0xbf   :  { %v516_v29 = vmul.f32 %v500_v16, %v451_v13  ;;  %v229_v13 = vadd.s32 1, %v1365_v27  ;;  %v196_v27 = vmul.u32 10, %v1373_v28 }
  0xc1   :  { %550 = vmatmul.f32.gmra.mxu3 %v516_v29  ;;  %v245_v29 = vmul.u32 10, %v229_v13 }
  0xc4   :  { %v453_v34 = vpop.f32.mrf.mxu1 }
  0xc5   :  { %v454_v35 = vadd.f32 %v453_v34, %v1394_v33  ;;  %v227_v34 = vadd.s32 1, %v1260_v9 }
  0xc7   :  { %v517_v37 = vmul.f32 %v501_v36, %v454_v35  ;;  %v244_v35 = vmul.u32 10, %v228_v30  ;;  %v243_v36 = vmul.u32 10, %v227_v34 }
  0xc9   :  { %553 = vmatmul.f32.gmra.mxu3 %v517_v37 }
  0xcc   :  { %v455_v39 = vpop.f32.mrf.mxu1 }
  0xcd   :  { %v456_v40 = vadd.f32 %v455_v39, %v1394_v33  ;;  %v237_v33 = vadd.s32 1, %v1275_v15  ;;  %v203_v15 = vmul.u32 10, %v1296_v18  ;;  %v233_v18 = vadd.s32 1, %v1334_v23 }
  0xcf   :  { %v518_v42 = vmul.f32 %v502_v41, %v456_v40  ;;  %v253_v49 = vmul.u32 10, %v237_v33  ;;  %vm1465_vm11 = vcmp.ge.s32.totalorder %v1262_v10, %v203_v15  ;;  %v249_v57 = vmul.u32 10, %v233_v18 }
  0xd0   :  { %vm283_vm15 = vmand %vm1465_vm11, %vm267_vm12 }
  0xd1   :  { %556 = vmatmul.f32.gmra.mxu3 %v518_v42  ;;  %vm269_vm5 = vcmp.lt.s32.totalorder %v1262_v10, %v253_v49  ;;  %vm300_vm2 = vmand %vm283_vm15, %vm291_vm13 }
  0xd2   :  { %vm285_vm6 = vmand %vm221_vm4, %vm269_vm5  ;;  %vm1493_vm5 = vcmp.ge.s32.totalorder %v1262_v10, %v201_v20 }
  0xd3   :  { %vm302_vm9 = vmand %vm285_vm6, %vm291_vm13  ;;  %vm1498_vm6 = vcmp.lt.s32.totalorder %v1262_v10, %v249_v57 }
  0xd4   :  { %1022 = vmatpush.msk.msra.mxu0 %vm302_vm9, %v1177_v19  ;;  %1038 = vmatpush.msk.msra.mxu1 %vm302_vm9, %v1177_v19  ;;  %vm282_vm4 = vmand %vm1479_vm1, %vm266_vm3  ;;  %vm1519_vm9 = vcmp.ge.s32.totalorder %v1262_v10, %v200_v60  ;;  %vm263_vm1 = vcmp.lt.s32.totalorder %v1262_v10, %v247_v5  ;;  %vm1553_vm3 = vcmp.ge.s32.totalorder %v1262_v10, %v198_v25 }
  0xd5   :  { %vm299_vm7 = vmand %vm282_vm4, %vm291_vm13  ;;  %vm262_vm4 = vcmp.lt.s32.totalorder %v1262_v10, %v246_v12 }
  0xd6   :  { %1023 = vmatpush.msk.msra.mxu0 %vm301_vm14, %v1177_v19  ;;  %1039 = vmatpush.msk.msra.mxu1 %vm301_vm14, %v1177_v19  ;;  %vm281_vm8 = vmand %vm1493_vm5, %vm1498_vm6  ;;  %vm1539_vm14 = vcmp.ge.s32.totalorder %v1262_v10, %v199_v2 }
  0xd7   :  { %vm298_vm11 = vmand %vm281_vm8, %vm291_vm13  ;;  %vm261_vm8 = vcmp.lt.s32.totalorder %v1262_v10, %v245_v29 }
  0xd8   :  { %1024 = vmatpush.msk.msra.mxu0 %vm300_vm2, %v1177_v19  ;;  %1040 = vmatpush.msk.msra.mxu1 %vm300_vm2, %v1177_v19  ;;  %vm280_vm12 = vmand %vm1519_vm9, %vm1524_vm10 }
  0xd9   :  { %vm297_vm15 = vmand %vm280_vm12, %vm291_vm13 }
  0xda   :  { %1025 = vmatpush.msk.msra.mxu0 %vm299_vm7, %v1177_v19  ;;  %1041 = vmatpush.msk.msra.mxu1 %vm299_vm7, %v1177_v19  ;;  %vm279_vm2 = vmand %vm1539_vm14, %vm263_vm1  ;;  %vm213_vm7 = vcmp.ge.s32.totalorder %v1262_v10, %v197_v26  ;;  %vm260_vm14 = vcmp.lt.s32.totalorder %v1262_v10, %v244_v35  ;;  %vm211_vm1 = vcmp.ge.s32.totalorder %v1262_v10, %v195_v6 }
  0xdb   :  { %vm296_vm5 = vmand %vm279_vm2, %vm291_vm13  ;;  %vm259_vm2 = vcmp.lt.s32.totalorder %v1262_v10, %v243_v36 }
  0xdc   :  { %1026 = vmatpush.msk.msra.mxu0 %vm298_vm11, %v1177_v19  ;;  %1042 = vmatpush.msk.msra.mxu1 %vm298_vm11, %v1177_v19  ;;  %vm278_vm6 = vmand %vm1553_vm3, %vm262_vm4  ;;  %vm212_vm11 = vcmp.ge.s32.totalorder %v1262_v10, %v196_v27 }
  0xdd   :  { %vm295_vm9 = vmand %vm278_vm6, %vm291_vm13  ;;  %vm805_vm6 = vcmask 1043459  }
  0xde   :  { %1027 = vmatpush.msk.msra.mxu0 %vm297_vm15, %v1177_v19  ;;  %1043 = vmatpush.msk.msra.mxu1 %vm297_vm15, %v1177_v19  ;;  %vm277_vm10 = vmand %vm213_vm7, %vm261_vm8  ;;  %vm807_vm7 = vcmask 1044484   ;;  %vm809_vm8 = vcmask 1045509  }
  0xdf   :  { %vm294_vm12 = vmand %vm277_vm10, %vm291_vm13  ;;  %vm813_vm10 = vcmask 1047559  }
  0xe0   :  { %1028 = vmatpush.msk.msra.mxu0 %vm296_vm5, %v1177_v19  ;;  %1044 = vmatpush.msk.msra.mxu1 %vm296_vm5, %v1177_v19  ;;  %vm276_vm15 = vmand %vm212_vm11, %vm260_vm14 }
  0xe1   :  { %vm293_vm3 = vmand %vm276_vm15, %vm291_vm13 }
  0xe2   :  { %1029 = vmatpush.msk.msra.mxu0 %vm295_vm9, %v1177_v19  ;;  %1045 = vmatpush.msk.msra.mxu1 %vm295_vm9, %v1177_v19  ;;  %vm275_vm4 = vmand %vm211_vm1, %vm259_vm2  ;;  %vm811_vm9 = vcmask 1046534  }
  0xe3   :  { %vm292_vm5 = vmand %vm275_vm4, %vm291_vm13  ;;  %vm803_vm13 = vcmask 1042434  }
  0xe4   :  { %1030 = vmatpush.msk.msra.mxu0 %vm294_vm12, %v1177_v19  ;;  %1046 = vmatpush.msk.msra.mxu1 %vm294_vm12, %v1177_v19 }
  0xe6   :  { %1031 = vmatpush.msk.msra.mxu0 %vm293_vm3, %v1177_v19  ;;  %1047 = vmatpush.msk.msra.mxu1 %vm293_vm3, %v1177_v19 }
  0xe8   :  { %1032 = vmatpush.msk.msra.mxu0 %vm292_vm5, %v1177_v19  ;;  %1048 = vmatpush.msk.msra.mxu1 %vm292_vm5, %v1177_v19 }
 0x11c   :  { %v536_v9 = vpop.f32.mrf.mxu3 }
 0x11d   :  { %v560_v28 = vmul.f32 0.31622776, %v536_v9 }
 0x11f   :  { %v568_v37 = vrot.slane %v560_v28, 4 }
 0x121   :  { %v569_v38 = vmax.f32 %v560_v28, %v568_v37 }
 0x123   :  { %v570_v39 = vrot.slane %v569_v38, 2 }
 0x124   :  { %v539_v40 = vpop.f32.mrf.mxu3 }
 0x125   :  { %v571_v41 = vmax.f32 %v569_v38, %v570_v39  ;;  %v561_v42 = vmul.f32 0.31622776, %v539_v40 }
 0x127   :  { %v572_v43 = vrot.slane %v571_v41, 1  ;;  %v574_v10 = vrot.slane %v561_v42, 4 }
 0x129   :  { %v573_v44 = vmax.f32 %v571_v41, %v572_v43  ;;  %v575_v45 = vmax.f32 %v561_v42, %v574_v10 }
 0x12b   :  { %v616_v46 = vsub.f32 %v560_v28, %v573_v44  ;;  %v576_v47 = vrot.slane %v575_v45, 2 }
 0x12c   :  { %v542_v32 = vpop.f32.mrf.mxu3 }
 0x12d   :  { %v624_v33 = vmul.f32 1.442695, %v616_v46  ;;  %v577_v19 = vmax.f32 %v575_v45, %v576_v47  ;;  %v562_v11 = vmul.f32 0.31622776, %v542_v32 }
 0x12f   :  { %1063 = vpow2.f32 %v624_v33  ;;  %v578_v48 = vrot.slane %v577_v19, 1  ;;  %v580_v49 = vrot.slane %v562_v11, 4 }
 0x131   :  { %v579_v7 = vmax.f32 %v577_v19, %v578_v48  ;;  %v581_v14 = vmax.f32 %v562_v11, %v580_v49 }
 0x133   :  { %v617_v50 = vsub.f32 %v561_v42, %v579_v7  ;;  %v582_v51 = vrot.slane %v581_v14, 2 }
 0x134   :  { %v545_v15 = vpop.f32.mrf.mxu3 }
 0x135   :  { %v1598_v52 = vpop.eup %1063  ;;  %v626_v17 = vmul.f32 1.442695, %v617_v50  ;;  %v583_v53 = vmax.f32 %v581_v14, %v582_v51  ;;  %v563_v54 = vmul.f32 0.31622776, %v545_v15 }
 0x136   :  { %704 = vmatmul.f32.vlgmr.msra.gmra.mxu0 %v1598_v52  ;;  %v640_v46 = vrot.slane %v1598_v52, 4 }
 0x137   :  { %1065 = vpow2.f32 %v626_v17  ;;  %v584_v18 = vrot.slane %v583_v53, 1  ;;  %v586_v55 = vrot.slane %v563_v54, 4 }
 0x138   :  { %v641_v14 = vadd.f32 %v1598_v52, %v640_v46 }
 0x139   :  { %v585_v56 = vmax.f32 %v583_v53, %v584_v18  ;;  %v587_v20 = vmax.f32 %v563_v54, %v586_v55 }
 0x13b   :  { %v618_v57 = vsub.f32 %v562_v11, %v585_v56  ;;  %v588_v58 = vrot.slane %v587_v20, 2  ;;  %v642_v56 = vrot.slane %v641_v14, 2 }
 0x13c   :  { %v548_v21 = vpop.f32.mrf.mxu3 }
 0x13d   :  { %v1066_v59 = vpop.eup %1065  ;;  %v628_v23 = vmul.f32 1.442695, %v618_v57  ;;  %v589_v60 = vmax.f32 %v587_v20, %v588_v58  ;;  %v564_v61 = vmul.f32 0.31622776, %v548_v21  ;;  %v643_v52 = vadd.f32 %v642_v56, %v641_v14  ;;  %v874_v56 = vld [vmem:[#allocation5 + $0x70] sm:$0xff] }
 0x13e   :  { %707 = vmatmul.f32.gmra.mxu0 %v1066_v59  ;;  %v646_v33 = vrot.slane %v1066_v59, 4 }
 0x13f   :  { %1067 = vpow2.f32 %v628_v23  ;;  %v590_v62 = vrot.slane %v589_v60, 1  ;;  %v592_v63 = vrot.slane %v564_v61, 4 }
 0x140   :  { %v647_v17 = vadd.f32 %v1066_v59, %v646_v33 }
 0x141   :  { %v591_v24 = vmax.f32 %v589_v60, %v590_v62  ;;  %v593_v0 = vmax.f32 %v564_v61, %v592_v63 }
 0x142   :  { %v648_v58 = vrot.slane %v647_v17, 2 }
 0x143   :  { %v619_v1 = vsub.f32 %v563_v54, %v591_v24  ;;  %v594_v2 = vrot.slane %v593_v0, 2 }
 0x144   :  { %v551_v3 = vpop.f32.mrf.mxu3 }
 0x145   :  { %v1068_v4 = vpop.eup %1067  ;;  %v630_v5 = vmul.f32 1.442695, %v619_v1  ;;  %v595_v8 = vmax.f32 %v593_v0, %v594_v2  ;;  %v565_v25 = vmul.f32 0.31622776, %v551_v3  ;;  %v649_v0 = vadd.f32 %v648_v58, %v647_v17  ;;  %v467_v17 = vpop.f32.mrf.mxu2  ;;  %v873_v58 = vld [vmem:[#allocation5 + $0x68] sm:$0xff] }
 0x146   :  { %710 = vmatmul.f32.gmra.mxu0 %v1068_v4  ;;  %v652_v19 = vrot.slane %v1068_v4, 4 }
 0x147   :  { %1069 = vpow2.f32 %v630_v5  ;;  %v596_v12 = vrot.slane %v595_v8, 1  ;;  %v598_v13 = vrot.slane %v565_v25, 4  ;;  %v644_v5 = vrot.slane %v643_v52, 1 }
 0x148   :  { %v653_v54 = vadd.f32 %v1068_v4, %v652_v19 }
 0x149   :  { %v597_v16 = vmax.f32 %v595_v8, %v596_v12  ;;  %v599_v26 = vmax.f32 %v565_v25, %v598_v13 }
 0x14a   :  { %v654_v23 = vrot.slane %v653_v54, 2 }
 0x14b   :  { %v620_v29 = vsub.f32 %v564_v61, %v597_v16  ;;  %v600_v30 = vrot.slane %v599_v26, 2 }
 0x14c   :  { %v554_v27 = vpop.f32.mrf.mxu3  ;;  %v655_v2 = vadd.f32 %v654_v23, %v653_v54 }
 0x14d   :  { %v1070_v34 = vpop.eup %1069  ;;  %v632_v22 = vmul.f32 1.442695, %v620_v29  ;;  %v601_v35 = vmax.f32 %v599_v26, %v600_v30  ;;  %v566_v6 = vmul.f32 0.31622776, %v554_v27  ;;  %v645_v27 = vadd.f32 %v644_v5, %v643_v52 }
 0x14e   :  { %713 = vmatmul.f32.gmra.mxu0 %v1070_v34  ;;  %v658_v49 = vrot.slane %v1070_v34, 4  ;;  %v656_v16 = vrot.slane %v655_v2, 1 }
 0x14f   :  { %1071 = vpow2.f32 %v632_v22  ;;  %v602_v36 = vrot.slane %v601_v35, 1  ;;  %v604_v9 = vrot.slane %v566_v6, 4 }
 0x150   :  { %v659_v55 = vadd.f32 %v1070_v34, %v658_v49 }
 0x151   :  { %v603_v28 = vmax.f32 %v601_v35, %v602_v36  ;;  %v605_v37 = vmax.f32 %v566_v6, %v604_v9  ;;  %v657_v36 = vadd.f32 %v656_v16, %v655_v2  ;;  %v866_v2 = vld [vmem:[#allocation5 + $0x30] sm:$0xff] }
 0x152   :  { %v660_v61 = vrot.slane %v659_v55, 2 }
 0x153   :  { %v621_v38 = vsub.f32 %v565_v25, %v603_v28  ;;  %v606_v39 = vrot.slane %v605_v37, 2  ;;  %v650_v25 = vrot.slane %v649_v0, 1 }
 0x154   :  { %v557_v40 = vpop.f32.mrf.mxu3  ;;  %v661_v3 = vadd.f32 %v660_v61, %v659_v55  ;;  %v875_v55 = vld [vmem:[#allocation5 + $0x78] sm:$0xff] }
 0x155   :  { %v1072_v41 = vpop.eup %1071  ;;  %v634_v42 = vmul.f32 1.442695, %v621_v38  ;;  %v607_v43 = vmax.f32 %v605_v37, %v606_v39  ;;  %v567_v10 = vmul.f32 0.31622776, %v557_v40  ;;  %v651_v22 = vadd.f32 %v650_v25, %v649_v0  ;;  %903 = vmatpush.msrb.mxu2 %v875_v55  ;;  %v871_v61 = vld [vmem:[#allocation5 + $0x58] sm:$0xff] }
 0x156   :  { %716 = vmatmul.f32.gmra.mxu0 %v1072_v41  ;;  %v664_v50 = vrot.slane %v1072_v41, 4  ;;  %v662_v26 = vrot.slane %v661_v3, 1  ;;  %v384_v25 = vperm.slane %v1389_v31, 1 }
 0x157   :  { %1073 = vpow2.f32 %v634_v42  ;;  %v608_v44 = vrot.slane %v607_v43, 1  ;;  %v610_v45 = vrot.slane %v567_v10, 4  ;;  %904 = vmatpush.msrb.mxu2 %v874_v56 }
 0x158   :  { %v665_v20 = vadd.f32 %v1072_v41, %v664_v50  ;;  %v663_v28 = vadd.f32 %v662_v26, %v661_v3  ;;  %v865_v3 = vld [vmem:[#allocation5 + $0x28] sm:$0xff] }
 0x159   :  { %v609_v47 = vmax.f32 %v607_v43, %v608_v44  ;;  %v611_v32 = vmax.f32 %v567_v10, %v610_v45  ;;  %905 = vmatpush.msrb.mxu2 %v873_v58 }
 0x15a   :  { %v666_v63 = vrot.slane %v665_v20, 2 }
 0x15b   :  { %v622_v11 = vsub.f32 %v566_v6, %v609_v47  ;;  %v612_v48 = vrot.slane %v611_v32, 2 }
 0x15c   :  { %v667_v8 = vadd.f32 %v666_v63, %v665_v20  ;;  %v869_v63 = vld [vmem:[#allocation5 + $0x48] sm:$0xff] }
 0x15d   :  { %v1074_v7 = vpop.eup %1073  ;;  %v636_v51 = vmul.f32 1.442695, %v622_v11  ;;  %v613_v15 = vmax.f32 %v611_v32, %v612_v48 }
 0x15e   :  { %v670_v53 = vrot.slane %v1074_v7, 4  ;;  %719 = vmatmul.f32.gmra.mxu0 %v1074_v7  ;;  %v668_v34 = vrot.slane %v667_v8, 1 }
 0x15f   :  { %1075 = vpow2.f32 %v636_v51  ;;  %v614_v18 = vrot.slane %v613_v15, 1 }
 0x160   :  { %v671_v21 = vadd.f32 %v1074_v7, %v670_v53  ;;  %v669_v38 = vadd.f32 %v668_v34, %v667_v8  ;;  %v469_v53 = vpop.f32.mrf.mxu2  ;;  %v864_v8 = vld [vmem:[#allocation5 + $0x20] sm:$0xff]  ;;  %v862_v34 = vld [vmem:[#allocation5 + $0x10] sm:$0xff] }
 0x161   :  { %v615_v57 = vmax.f32 %v613_v15, %v614_v18  ;;  %v470_v16 = vadd.f32 %v469_v53, %v384_v25 }
 0x162   :  { %v672_v59 = vrot.slane %v671_v21, 2 }
 0x163   :  { %v623_v60 = vsub.f32 %v567_v10, %v615_v57 }
 0x164   :  { %v673_v12 = vadd.f32 %v672_v59, %v671_v21  ;;  %v872_v21 = vld [vmem:[#allocation5 + $0x60] sm:$0xff] }
 0x165   :  { %v1076_v62 = vpop.eup %1075  ;;  %v638_v24 = vmul.f32 1.442695, %v623_v60  ;;  %906 = vmatpush.msrb.mxu2 %v872_v21 }
 0x166   :  { %v676_v1 = vrot.slane %v1076_v62, 4  ;;  %722 = vmatmul.f32.gmra.mxu0 %v1076_v62  ;;  %v674_v35 = vrot.slane %v673_v12, 1 }
 0x167   :  { %1077 = vpow2.f32 %v638_v24  ;;  %907 = vmatpush.msrb.mxu2 %v871_v61  ;;  %v868_v24 = vld [vmem:[#allocation5 + $0x40] sm:$0xff] }
 0x168   :  { %v677_v4 = vadd.f32 %v1076_v62, %v676_v1  ;;  %1079 = vrcp.f32 %v645_v27  ;;  %v675_v40 = vadd.f32 %v674_v35, %v673_v12  ;;  %v472_v18 = vpop.f32.mrf.mxu2  ;;  %v870_v62 = vld [vmem:[#allocation5 + $0x50] sm:$0xff]  ;;  %v867_v1 = vld [vmem:[#allocation5 + $0x38] sm:$0xff] }
 0x169   :  { %1081 = vrcp.f32 %v651_v22  ;;  %908 = vmatpush.msrb.mxu2 %v870_v62  ;;  %v863_v12 = vld [vmem:[#allocation5 + $0x18] sm:$0xff]  ;;  %v473_v26 = vadd.f32 %v472_v18, %v384_v25  ;;  %v861_v22 = vld [vmem:[#allocation5 + $0x8] sm:$0xff] }
 0x16a   :  { %v678_v13 = vrot.slane %v677_v4, 2  ;;  %1083 = vrcp.f32 %v657_v36 }
 0x16b   :  { %1085 = vrcp.f32 %v663_v28  ;;  %909 = vmatpush.msrb.mxu2 %v869_v63  ;;  %v860_v28 = vld [vmem:[#allocation5] sm:$0xff] }
 0x16c   :  { %v679_v29 = vadd.f32 %v678_v13, %v677_v4  ;;  %1087 = vrcp.f32 %v669_v38  ;;  %v468_v13 = vadd.f32 %v467_v17, %v384_v25 }
 0x16d   :  { %v1078_v30 = vpop.eup %1077  ;;  %1089 = vrcp.f32 %v675_v40  ;;  %910 = vmatpush.msrb.mxu2 %v868_v24 }
 0x16e   :  { %v682_v6 = vrot.slane %v1078_v30, 4  ;;  %725 = vmatmul.f32.gmra.mxu0 %v1078_v30  ;;  %v680_v9 = vrot.slane %v679_v29, 1  ;;  %v1080_v10 = vpop.eup %1079 }
 0x16f   :  { %v1082_v44 = vpop.eup %1081  ;;  %911 = vmatpush.msrb.mxu2 %v867_v1 }
 0x170   :  { %v683_v37 = vadd.f32 %v1078_v30, %v682_v6  ;;  %v681_v41 = vadd.f32 %v680_v9, %v679_v29  ;;  %v1084_v46 = vpop.eup %1083  ;;  %v802_v33 = vsel %vm801_vm0, %v1082_v44, %v1080_v10  ;;  %v474_v57 = vpop.f32.mrf.mxu2 }
 0x171   :  { %v1086_v47 = vpop.eup %1085  ;;  %v804_v11 = vsel %vm803_vm13, %v1084_v46, %v802_v33  ;;  %912 = vmatpush.msrb.mxu2 %v866_v2  ;;  %v475_v29 = vadd.f32 %v474_v57, %v384_v25 }
 0x172   :  { %v684_v39 = vrot.slane %v683_v37, 2  ;;  %1091 = vrcp.f32 %v681_v41  ;;  %v1088_v32 = vpop.eup %1087  ;;  %v806_v49 = vsel %vm805_vm6, %v1086_v47, %v804_v11 }
 0x173   :  { %v1090_v19 = vpop.eup %1089  ;;  %v808_v7 = vsel %vm807_vm7, %v1088_v32, %v806_v49  ;;  %913 = vmatpush.msrb.mxu2 %v865_v3 }
 0x174   :  { %v685_v42 = vadd.f32 %v684_v39, %v683_v37  ;;  %v810_v14 = vsel %vm809_vm8, %v1090_v19, %v808_v7 }
 0x175   :  { %914 = vmatpush.msrb.mxu2 %v864_v8 }
 0x176   :  { %v686_v43 = vrot.slane %v685_v42, 1 }
 0x177   :  { %915 = vmatpush.msrb.mxu2 %v863_v12 }
 0x178   :  { %v687_v45 = vadd.f32 %v686_v43, %v685_v42  ;;  %v1092_v48 = vpop.eup %1091  ;;  %v477_v60 = vpop.f32.mrf.mxu2 }
 0x179   :  { %v812_v51 = vsel %vm811_vm9, %v1092_v48, %v810_v14  ;;  %v478_v27 = vadd.f32 %v477_v60, %v384_v25  ;;  %916 = vmatpush.msrb.mxu2 %v862_v34 }
 0x17a   :  { %1093 = vrcp.f32 %v687_v45 }
 0x17b   :  { %917 = vmatpush.msrb.mxu2 %v861_v22 }
 0x17d   :  { %918 = vmatpush.msrb.mxu2 %v860_v28 }
 0x180   :  { %v1094_v50 = vpop.eup %1093  ;;  %v479_v0 = vpop.f32.mrf.mxu2 }
 0x181   :  { %v814_v15 = vsel %vm813_vm10, %v1094_v50, %v812_v51  ;;  %v480_v35 = vadd.f32 %v479_v0, %v384_v25 }
 0x182   :  { %832 = vmatmul.f32.vlgmr.msra.gmra.mxu1 %v814_v15 }
 0x188   :  { %v482_v5 = vpop.f32.mrf.mxu2 }
 0x189   :  { %v483_v31 = vadd.f32 %v482_v5, %v384_v25 }
 0x190   :  { %v484_v6 = vpop.f32.mrf.mxu2 }
 0x191   :  { %v485_v40 = vadd.f32 %v484_v6, %v384_v25 }
 0x1b3   :  { %v705_v54 = vpop.f32.mrf.mxu0 }
 0x1b4   :  { %v729_v36 = vmul.f32 %v705_v54, %v468_v13 }
 0x1b6   :  { %v737_v42 = vrot.slane %v729_v36, 4 }
 0x1b8   :  { %v738_v19 = vadd.f32 %v737_v42, %v729_v36 }
 0x1ba   :  { %v739_v15 = vrot.slane %v738_v19, 2 }
 0x1bb   :  { %v708_v20 = vpop.f32.mrf.mxu0 }
 0x1bc   :  { %v730_v9 = vmul.f32 %v708_v20, %v470_v16  ;;  %v740_v57 = vadd.f32 %v739_v15, %v738_v19  ;;  %v1062_v15 = vld [vmem:[%s1633_s7] ss:$0 sm:$0xff] }
 0x1be   :  { %v743_v43 = vrot.slane %v730_v9, 4  ;;  %v741_v63 = vrot.slane %v740_v57, 1 }
 0x1c0   :  { %v744_v11 = vadd.f32 %v743_v43, %v730_v9  ;;  %v742_v5 = vadd.f32 %v741_v63, %v740_v57 }
 0x1c2   :  { %v745_v17 = vrot.slane %v744_v11, 2 }
 0x1c3   :  { %v711_v23 = vpop.f32.mrf.mxu0 }
 0x1c4   :  { %v731_v37 = vmul.f32 %v711_v23, %v473_v26  ;;  %v746_v58 = vadd.f32 %v745_v17, %v744_v11 }
 0x1c6   :  { %v749_v10 = vrot.slane %v731_v37, 4  ;;  %v747_v24 = vrot.slane %v746_v58, 1 }
 0x1c8   :  { %v750_v48 = vadd.f32 %v749_v10, %v731_v37  ;;  %v748_v8 = vadd.f32 %v747_v24, %v746_v58 }
 0x1ca   :  { %v751_v53 = vrot.slane %v750_v48, 2 }
 0x1cb   :  { %v714_v52 = vpop.f32.mrf.mxu0 }
 0x1cc   :  { %v732_v38 = vmul.f32 %v714_v52, %v475_v29  ;;  %v752_v21 = vadd.f32 %v751_v53, %v750_v48 }
 0x1ce   :  { %v755_v44 = vrot.slane %v732_v38, 4  ;;  %v753_v0 = vrot.slane %v752_v21, 1 }
 0x1d0   :  { %v756_v49 = vadd.f32 %v755_v44, %v732_v38  ;;  %v754_v25 = vadd.f32 %v753_v0, %v752_v21 }
 0x1d2   :  { %v757_v54 = vrot.slane %v756_v49, 2 }
 0x1d3   :  { %v717_v59 = vpop.f32.mrf.mxu0 }
 0x1d4   :  { %v733_v39 = vmul.f32 %v717_v59, %v478_v27  ;;  %v758_v23 = vadd.f32 %v757_v54, %v756_v49 }
 0x1d6   :  { %v761_v47 = vrot.slane %v733_v39, 4  ;;  %v759_v59 = vrot.slane %v758_v23, 1 }
 0x1d8   :  { %v762_v50 = vadd.f32 %v761_v47, %v733_v39  ;;  %v760_v12 = vadd.f32 %v759_v59, %v758_v23 }
 0x1da   :  { %v763_v56 = vrot.slane %v762_v50, 2 }
 0x1db   :  { %v720_v4 = vpop.f32.mrf.mxu0 }
 0x1dc   :  { %v734_v41 = vmul.f32 %v720_v4, %v480_v35  ;;  %v764_v62 = vadd.f32 %v763_v56, %v762_v50 }
 0x1de   :  { %v767_v33 = vrot.slane %v734_v41, 4  ;;  %v765_v3 = vrot.slane %v764_v62, 1 }
 0x1e0   :  { %v768_v51 = vadd.f32 %v767_v33, %v734_v41  ;;  %v766_v29 = vadd.f32 %v765_v3, %v764_v62 }
 0x1e2   :  { %v769_v20 = vrot.slane %v768_v51, 2 }
 0x1e3   :  { %v723_v30 = vpop.f32.mrf.mxu0 }
 0x1e4   :  { %v735_v45 = vmul.f32 %v723_v30, %v483_v31  ;;  %v770_v52 = vadd.f32 %v769_v20, %v768_v51 }
 0x1e6   :  { %v773_v7 = vrot.slane %v735_v45, 4  ;;  %v771_v4 = vrot.slane %v770_v52, 1 }
 0x1e8   :  { %v774_v18 = vadd.f32 %v773_v7, %v735_v45  ;;  %v772_v22 = vadd.f32 %v771_v4, %v770_v52 }
 0x1ea   :  { %v775_v60 = vrot.slane %v774_v18, 2 }
 0x1eb   :  { %v726_v46 = vpop.f32.mrf.mxu0 }
 0x1ec   :  { %v736_v32 = vmul.f32 %v726_v46, %v485_v40  ;;  %v776_v1 = vadd.f32 %v775_v60, %v774_v18 }
 0x1ee   :  { %v779_v14 = vrot.slane %v736_v32, 4  ;;  %v777_v13 = vrot.slane %v776_v1, 1 }
 0x1f0   :  { %v780_v55 = vadd.f32 %v779_v14, %v736_v32  ;;  %v778_v31 = vadd.f32 %v777_v13, %v776_v1 }
 0x1f2   :  { %v781_v61 = vrot.slane %v780_v55, 2 }
 0x1f4   :  { %v782_v2 = vadd.f32 %v781_v61, %v780_v55 }
 0x1f6   :  { %v783_v16 = vrot.slane %v782_v2, 1 }
 0x1f8   :  { %v784_v39 = vadd.f32 %v783_v16, %v782_v2 }
 0x1ff   :  { %v833_v26 = vpop.f32.mrf.mxu1 }
 0x200   :  { %v837_v30 = vrot.slane %v833_v26, 1  ;;  %v838_v27 = vrot.slane %v833_v26, 2  ;;  %v839_v34 = vrot.slane %v833_v26, 3  ;;  %v840_v35 = vrot.slane %v833_v26, 4 }
 0x201   :  { %v841_v6 = vrot.slane %v833_v26, 5  ;;  %v842_v36 = vrot.slane %v833_v26, 6  ;;  %v843_v37 = vrot.slane %v833_v26, 7  ;;  %v852_v41 = vmul.f32 %v833_v26, %v742_v5 }
 0x202   :  { %v853_v9 = vmul.f32 %v837_v30, %v748_v8  ;;  %v854_v28 = vmul.f32 %v838_v27, %v754_v25  ;;  %v855_v38 = vmul.f32 %v839_v34, %v760_v12  ;;  %v856_v40 = vmul.f32 %v840_v35, %v766_v29 }
 0x203   :  { %v857_v43 = vmul.f32 %v841_v6, %v772_v22  ;;  %v858_v44 = vmul.f32 %v842_v36, %v778_v31  ;;  %v859_v45 = vmul.f32 %v843_v37, %v784_v39 }
 0x204   :  { %v888_v42 = vrot.slane %v853_v9, 7  ;;  %v890_v10 = vrot.slane %v854_v28, 6  ;;  %v892_v47 = vrot.slane %v855_v38, 5  ;;  %v894_v33 = vrot.slane %v856_v40, 4 }
 0x205   :  { %v896_v11 = vrot.slane %v857_v43, 3  ;;  %v898_v49 = vrot.slane %v858_v44, 2  ;;  %v900_v14 = vrot.slane %v859_v45, 1 }
 0x206   :  { %v889_v46 = vsel %vm801_vm0, %v888_v42, %v852_v41 }
 0x207   :  { %v891_v32 = vsel %vm803_vm13, %v890_v10, %v889_v46 }
 0x208   :  { %v893_v19 = vsel %vm805_vm6, %v892_v47, %v891_v32 }
 0x209   :  { %v895_v48 = vsel %vm807_vm7, %v894_v33, %v893_v19 }
 0x20a   :  { %v897_v7 = vsel %vm809_vm8, %v896_v11, %v895_v48 }
 0x20b   :  { %v899_v50 = vsel %vm811_vm9, %v898_v49, %v897_v7 }
 0x20c   :  { %v901_v51 = vsel %vm813_vm10, %v900_v14, %v899_v50 }
 0x20d   :  { %919 = vmatmul.f32.vlgmr.msrb.gmra.mxu2 %v901_v51 }
 0x290   :  { %v920_v17 = vpop.f32.mrf.mxu2 }
 0x291   :  { %v921_v53 = vadd.f32 %v1062_v15, %v920_v17 }
 0x293   :  { %923 = vst [vmem:[#allocation7] sm:$0xff] %v921_v53 }
 0x294   :  { %934 = dma.vmem_to_hbm [thread:$0]  %s930_s15, 128, %s932_s17, [#allocation4]  }
 0x295   :  { %1171 = dma.done.wait [#allocation4], 128  }
 0x296   :  { %1172 = vsyncadd [#allocation4], 4294967168 }
 0x297   :  { %939 = vsyncpa [#allocation3], 1 }
 0x298   :  { %940 = vsyncpa [#allocation6], 1 }
 0x299   :  { %941 = vsyncpa [#allocation4], 1 }

</bundles_post_ra>
